<compile_context>
chip_gen: v6e
topology: v6e:2x2x1
jax: 0.10.0
libtpu: 0.0.40
codegen_flags: <defaults>
</compile_context>

<pallas_src>
import functools

import jax
import jax.numpy as jnp
from jax.experimental import pallas as pl
from jax.experimental.pallas import tpu as pltpu

EPS = 1e-6


# ---------------------------------------------------------------------------
# Hardware-aware budgets (v5e/v6e: 128 MiB VMEM per core, v7x: 64 MiB).
# ---------------------------------------------------------------------------
def _tpu_vmem_capacity_bytes() -> int:
    try:
        return int(pltpu.get_tpu_info().vmem_capacity_bytes)
    except Exception:
        return 64 * 1024 * 1024  # conservative fallback (v7x per-core VMEM)


_VMEM_PHYS = min(max(_tpu_vmem_capacity_bytes(), 32 << 20), 128 << 20)
_VMEM_LIMIT = max(16 << 20, int(_VMEM_PHYS * 0.75))     # scoped limit w/ headroom
_FUSED_MAX_BYTES = _VMEM_PHYS // 5                       # x fully-resident gate
# Pipelined passes use at most ~6 refs x tile (residual add: 3 refs x 2 bufs).
_DEFAULT_TILE_BYTES = max(1 << 20, _VMEM_LIMIT // 8)     # ~6 MiB v7x, ~12 MiB v5e/v6e


# ---------------------------------------------------------------------------
# Kernels
# ---------------------------------------------------------------------------
def _fused_norm_kernel(x_ref, alpha_ref, bias_ref, o_ref, *, n, inv_nm1, eps):
    """Small-x path: whole tensor resident in VMEM -> stats + normalize fused."""
    x = x_ref[...].astype(jnp.float32)
    s = jnp.sum(x, keepdims=True)                     # (1, 1)
    ss = jnp.sum(x * x, keepdims=True)                # (1, 1)
    mean = s / n
    var = jnp.maximum((ss - n * mean * mean) * inv_nm1, 0.0)
    inv = 1.0 / (jnp.sqrt(var) + eps)
    scale = alpha_ref[...] * inv                      # (1, F)
    shift = bias_ref[...] - mean * scale              # (1, F)
    o_ref[...] = (x * scale + shift).astype(o_ref.dtype)


def _sum_sumsq_kernel(x_ref, s_ref, ss_ref, *, tile_r, acc_r, n_rows,
                      tiles_per_split, mask_tail):
    """Pass 1 (large x): per-core-split partial sum / sum-of-squares.

    The accumulators are the vreg-shaped output blocks themselves (constant
    block index along the 'arbitrary' row-tile axis), so the hot loop is pure
    VPU adds: no per-tile XLU full reduce and no vreg->SMEM round trip.
    Accuracy note: distributing the accumulation over acc_r*F lanes greatly
    reduces f32 accumulation error vs a single scalar accumulator (strict
    torch-parity for extreme n would need Kahan / two-pass variance).
    """
    c = pl.program_id(0)
    i = pl.program_id(1)

    @pl.when(i == 0)
    def _init():
        s_ref[...] = jnp.zeros_like(s_ref)
        ss_ref[...] = jnp.zeros_like(ss_ref)

    x = x_ref[...].astype(jnp.float32)                # (tile_r, F)
    if mask_tail:
        # cdiv grid: zero the padded rows of the (possibly partial) last tile.
        tile_idx = c * tiles_per_split + i
        rows_left = n_rows - tile_idx * tile_r
        rid = jax.lax.broadcasted_iota(jnp.int32, x.shape, 0)
        x = jnp.where(rid < rows_left, x, 0.0)

    if acc_r > 1:
        xg = x.reshape(tile_r // acc_r, acc_r, x.shape[-1])
        s = jnp.sum(xg, axis=0)                       # (acc_r, F): VPU-only adds
        ss = jnp.sum(xg * xg, axis=0)
    else:  # tiny-tile corner case (tile_r < 8)
        s = jnp.sum(x, axis=0, keepdims=True)
        ss = jnp.sum(x * x, axis=0, keepdims=True)

    s_ref[0] += s
    ss_ref[0] += ss


def _scale_shift_kernel(x_ref, scale_ref, shift_ref, o_ref):
    """Pass 2: y = x * scale + shift (norm + affine folded into one FMA)."""
    y = x_ref[...].astype(jnp.float32) * scale_ref[...] + shift_ref[...]
    o_ref[...] = y.astype(o_ref.dtype)


def _residual_add_kernel(x_ref, y_ref, o_ref):
    o_ref[...] = x_ref[...] + y_ref[...]


# ---------------------------------------------------------------------------
# Tiling helpers
# ---------------------------------------------------------------------------
def _sublane_multiple(itemsize: int) -> int:
    # dtype-aware sublane packing: 8 for f32, 16 for bf16, 32 for int8/fp8.
    return max(8, 32 // max(1, itemsize))


def _lane_pack_factor(n_rows: int, features: int) -> int:
    """How many rows to pack per lane-dense row so the last dim is k*128."""
    if features % 128 == 0:
        return 1
    if 128 % features == 0:
        rep = 128 // features
        if n_rows % rep == 0:
            return rep
    return 1


def _pick_row_tile(n_rows, n_cols, itemsize, max_bytes):
    """Largest row tile (multiple of the sublane quantum) fitting max_bytes.

    Prefers an exact divisor of n_rows (no partial last block); otherwise the
    callers use cdiv grids (+ explicit masking in the statistics pass).  Never
    falls back to a full-extent block for large n_rows.
    """
    sub = _sublane_multiple(itemsize)
    if n_rows <= sub:
        return n_rows                 # full extent (legal: equals the array dim)
    max_rows = min(n_rows, max(1, max_bytes // max(1, n_cols * itemsize)))
    max_rows = max(sub, max_rows - max_rows % sub)
    r, steps = max_rows, 0
    while r >= sub and steps < 4096:  # bounded divisor search
        if n_rows % r == 0:
            return r
        r -= sub
        steps += 1
    return max_rows                   # cdiv grid with partial last block


# ---------------------------------------------------------------------------
# pallas_call wrappers
# ---------------------------------------------------------------------------
def _fused_normalize(x2d, alpha_row, bias_row):
    R, F = x2d.shape
    n = R * F
    kernel = functools.partial(_fused_norm_kernel, n=float(n),
                               inv_nm1=1.0 / max(n - 1, 1), eps=EPS)
    return pl.pallas_call(
        kernel,
        out_shape=jax.ShapeDtypeStruct((R, F), x2d.dtype),
        compiler_params=pltpu.CompilerParams(vmem_limit_bytes=_VMEM_LIMIT),
    )(x2d, alpha_row, bias_row)


def _global_sum_sumsq(x2d, tile_bytes):
    """Pass 1: returns (total_sum, total_sum_sq) as scalar f32 values."""
    R, F = x2d.shape
    tile_r = _pick_row_tile(R, F, x2d.dtype.itemsize, tile_bytes)
    n_tiles = pl.cdiv(R, tile_r)
    mask_tail = (R % tile_r) != 0
    # Leading "parallel" axis: shards the HBM-bound reduction across both
    # TensorCores on v7x; on single-core v5e/v6e it simply serializes.
    n_split = 2 if (n_tiles >= 2 and n_tiles % 2 == 0) else 1
    tiles_per_split = n_tiles // n_split
    acc_r = 8 if tile_r % 8 == 0 else 1

    kernel = functools.partial(
        _sum_sumsq_kernel, tile_r=tile_r, acc_r=acc_r, n_rows=R,
        tiles_per_split=tiles_per_split, mask_tail=mask_tail)

    sum_p, sumsq_p = pl.pallas_call(
        kernel,
        out_shape=(jax.ShapeDtypeStruct((n_split, acc_r, F), jnp.float32),
                   jax.ShapeDtypeStruct((n_split, acc_r, F), jnp.float32)),
        grid=(n_split, tiles_per_split),
        in_specs=[pl.BlockSpec((tile_r, F),
                               lambda c, i: (c * tiles_per_split + i, 0))],
        out_specs=[pl.BlockSpec((1, acc_r, F), lambda c, i: (c, 0, 0)),
                   pl.BlockSpec((1, acc_r, F), lambda c, i: (c, 0, 0))],
        compiler_params=pltpu.CompilerParams(
            dimension_semantics=("parallel", "arbitrary"),
            vmem_limit_bytes=_VMEM_LIMIT),
    )(x2d)
    return jnp.sum(sum_p), jnp.sum(sumsq_p)


def _apply_scale_shift(x2d, scale_row, shift_row, tile_bytes):
    R, F = x2d.shape
    tile_r = _pick_row_tile(R, F, x2d.dtype.itemsize, tile_bytes)
    return pl.pallas_call(
        _scale_shift_kernel,
        out_shape=jax.ShapeDtypeStruct((R, F), x2d.dtype),
        grid=(pl.cdiv(R, tile_r),),
        in_specs=[
            pl.BlockSpec((tile_r, F), lambda i: (i, 0)),
            pl.BlockSpec((1, F), lambda i: (0, 0)),
            pl.BlockSpec((1, F), lambda i: (0, 0)),
        ],
        out_specs=pl.BlockSpec((tile_r, F), lambda i: (i, 0)),
        compiler_params=pltpu.CompilerParams(
            dimension_semantics=("parallel",),
            vmem_limit_bytes=_VMEM_LIMIT),
    )(x2d, scale_row, shift_row)


def _residual_add(x2d, y2d, tile_bytes):
    """Optional Pallas residual add (default path is plain JAX, see below)."""
    R, F = x2d.shape
    tile_r = _pick_row_tile(R, F, x2d.dtype.itemsize, tile_bytes)
    return pl.pallas_call(
        _residual_add_kernel,
        out_shape=jax.ShapeDtypeStruct((R, F), x2d.dtype),
        grid=(pl.cdiv(R, tile_r),),
        in_specs=[
            pl.BlockSpec((tile_r, F), lambda i: (i, 0)),
            pl.BlockSpec((tile_r, F), lambda i: (i, 0)),
        ],
        out_specs=pl.BlockSpec((tile_r, F), lambda i: (i, 0)),
        input_output_aliases={0: 0},  # reuse the x buffer when it is dead
        compiler_params=pltpu.CompilerParams(
            dimension_semantics=("parallel",),
            vmem_limit_bytes=_VMEM_LIMIT),
    )(x2d, y2d)


# ---------------------------------------------------------------------------
# Residual block forward
# ---------------------------------------------------------------------------
def residual_block(x, alpha, bias, sublayer, *, force_two_pass=False,
                   max_tile_bytes=None, residual_in_pallas=False):
    """out = x + dropout(sublayer(LayerNormalization(x)))  (eval-mode dropout)."""
    B, S, F = x.shape
    R = B * S
    n = R * F
    tile_bytes = _DEFAULT_TILE_BYTES if max_tile_bytes is None else max_tile_bytes

    # Lane-dense packing: view (R, F) as (R/rep, rep*F) so blocks are k*128 wide.
    rep = _lane_pack_factor(R, F)
    R_eff, F_eff = R // rep, F * rep
    x2d = x.reshape(R_eff, F_eff)

    alpha_l = jnp.tile(alpha.astype(jnp.float32), rep).reshape(1, F_eff)
    bias_l = jnp.tile(bias.astype(jnp.float32), rep).reshape(1, F_eff)

    x_bytes = R_eff * F_eff * x2d.dtype.itemsize
    if (not force_two_pass) and x_bytes <= _FUSED_MAX_BYTES:
        # Small-x path: x fully resident in VMEM -> one HBM read + one write.
        normed2d = _fused_normalize(x2d, alpha_l, bias_l)
    else:
        # Pass 1: global sum / sum-of-squares (single HBM read of x).
        s_tot, ss_tot = _global_sum_sumsq(x2d, tile_bytes)
        mean = s_tot / n
        # torch .std() is unbiased (divides by N-1); guard the degenerate n == 1.
        var = jnp.maximum((ss_tot - n * mean * mean) / max(n - 1, 1), 0.0)
        inv = 1.0 / (jnp.sqrt(var) + EPS)
        # Fold norm + affine into a single per-feature scale/shift pair.
        scale = alpha_l * inv
        shift = bias_l - mean * scale
        # Pass 2: y = x*scale + shift (tiled, lane-dense, "parallel" grid axis).
        normed2d = _apply_scale_shift(x2d, scale, shift, tile_bytes)

    normed = normed2d.reshape(B, S, F)

    # Arbitrary user sublayer (plain JAX glue between the Pallas passes).
    sub_out = sublayer(normed)

    # Residual add; nn.Dropout in eval mode is identity.
    # TODO(synk): training-mode stochastic dropout omitted (eval-mode identity).
    if residual_in_pallas:
        out2d = _residual_add(x2d, sub_out.reshape(R_eff, F_eff), tile_bytes)
        return out2d.reshape(B, S, F)
    # Default: plain JAX add so XLA can fuse it into the sublayer epilogue
    # (avoids one extra HBM round trip through a standalone elementwise kernel).
    return x + sub_out


def _reference(x, alpha, bias, sublayer):
    mean = x.mean()
    std = jnp.std(x, ddof=1)
    normed = alpha * (x - mean) / (std + EPS) + bias
    return x + sublayer(normed)


if __name__ == "__main__":
    features = 32
    # Deterministic parameter init, matching the module's __init__:
    alpha = jnp.ones((features,), dtype=jnp.float32)   # nn.Parameter(torch.ones)
    bias = jnp.zeros((features,), dtype=jnp.float32)   # nn.Parameter(torch.zeros)
    sublayer = lambda t: t                             # user-supplied callable

    key = jax.random.PRNGKey(0)
    k1, k2 = jax.random.split(key)

    # --- Path A: fused small-x path (module-sized shapes). ---
    x = jax.random.normal(k1, (2, 8, features), dtype=jnp.float32)
    ref = jax.block_until_ready(_reference(x, alpha, bias, sublayer))
    out = jax.block_until_ready(residual_block(x, alpha, bias, sublayer))
    assert out.shape == x.shape and out.dtype == x.dtype
    assert jnp.allclose(out, ref, atol=1e-5, rtol=1e-5), "fused path mismatch"

    # --- Path B: tiled two-pass path, forced small tiles to exercise the
    #     multi-tile / dual-core-split / vreg-accumulator / tail-masking and
    #     aliased residual-add machinery on a still-small problem. ---
    x2 = jax.random.normal(k2, (5, 16, features), dtype=jnp.float32)
    ref2 = jax.block_until_ready(_reference(x2, alpha, bias, sublayer))
    out2 = jax.block_until_ready(
        residual_block(x2, alpha, bias, sublayer,
                       force_two_pass=True, max_tile_bytes=8 * 1024,
                       residual_in_pallas=True))
    assert out2.shape == x2.shape and out2.dtype == x2.dtype
    assert jnp.allclose(out2, ref2, atol=1e-5, rtol=1e-5), "two-pass path mismatch"

    print("KERNEL_OK")
</pallas_src>

<mosaic_0001>
module attributes {stable_mosaic.version = 11 : i64} {
  func.func @_fused_norm_kernel(%arg0: memref<4x128xf32, #tpu.memory_space<vmem>>, %arg1: memref<1x128xf32, #tpu.memory_space<vmem>>, %arg2: memref<1x128xf32, #tpu.memory_space<vmem>>, %arg3: memref<4x128xf32, #tpu.memory_space<vmem>>) attributes {dimension_semantics = [], scalar_prefetch = 0 : i64, scratch_operands = 0 : i64, tpu.core_type = #tpu.core_type<tc>} {
    %c0 = arith.constant 0 : index
    %c0_0 = arith.constant 0 : index
    %0 = vector.load %arg0[%c0, %c0_0] : memref<4x128xf32, #tpu.memory_space<vmem>>, vector<4x128xf32>
    %1 = vector.shape_cast %0 : vector<4x128xf32> to vector<1x4x128xf32>
    %cst = arith.constant dense<0.000000e+00> : vector<1xf32>
    %2 = vector.multi_reduction <add>, %1, %cst [1, 2] : vector<1x4x128xf32> to vector<1xf32>
    %3 = vector.shape_cast %2 : vector<1xf32> to vector<1x1x1xf32>
    %4 = vector.extract %3[0, 0, 0] : f32 from vector<1x1x1xf32>
    %5 = vector.broadcast %4 : f32 to vector<1x1xf32>
    %6 = arith.mulf %0, %0 : vector<4x128xf32>
    %7 = vector.shape_cast %6 : vector<4x128xf32> to vector<1x4x128xf32>
    %cst_1 = arith.constant dense<0.000000e+00> : vector<1xf32>
    %8 = vector.multi_reduction <add>, %7, %cst_1 [1, 2] : vector<1x4x128xf32> to vector<1xf32>
    %9 = vector.shape_cast %8 : vector<1xf32> to vector<1x1x1xf32>
    %10 = vector.extract %9[0, 0, 0] : f32 from vector<1x1x1xf32>
    %11 = vector.broadcast %10 : f32 to vector<1x1xf32>
    %cst_2 = arith.constant 5.120000e+02 : f32
    %12 = vector.broadcast %cst_2 : f32 to vector<1x1xf32>
    %13 = arith.divf %5, %12 : vector<1x1xf32>
    %cst_3 = arith.constant 5.120000e+02 : f32
    %14 = vector.broadcast %cst_3 : f32 to vector<1x1xf32>
    %15 = arith.mulf %14, %13 : vector<1x1xf32>
    %16 = arith.mulf %15, %13 : vector<1x1xf32>
    %17 = arith.subf %11, %16 : vector<1x1xf32>
    %cst_4 = arith.constant 0.00195694715 : f32
    %18 = vector.broadcast %cst_4 : f32 to vector<1x1xf32>
    %19 = arith.mulf %17, %18 : vector<1x1xf32>
    %cst_5 = arith.constant 0.000000e+00 : f32
    %20 = vector.broadcast %cst_5 : f32 to vector<1x1xf32>
    %21 = arith.maximumf %19, %20 : vector<1x1xf32>
    %22 = math.sqrt %21 : vector<1x1xf32>
    %cst_6 = arith.constant 9.99999997E-7 : f32
    %23 = vector.broadcast %cst_6 : f32 to vector<1x1xf32>
    %24 = arith.addf %22, %23 : vector<1x1xf32>
    %cst_7 = arith.constant 1.000000e+00 : f32
    %25 = vector.broadcast %cst_7 : f32 to vector<1x1xf32>
    %26 = arith.divf %25, %24 : vector<1x1xf32>
    %c0_8 = arith.constant 0 : index
    %c0_9 = arith.constant 0 : index
    %27 = vector.load %arg1[%c0_8, %c0_9] : memref<1x128xf32, #tpu.memory_space<vmem>>, vector<1x128xf32>
    %28 = vector.broadcast %26 : vector<1x1xf32> to vector<1x128xf32>
    %29 = arith.mulf %27, %28 : vector<1x128xf32>
    %c0_10 = arith.constant 0 : index
    %c0_11 = arith.constant 0 : index
    %30 = vector.load %arg2[%c0_10, %c0_11] : memref<1x128xf32, #tpu.memory_space<vmem>>, vector<1x128xf32>
    %31 = vector.broadcast %13 : vector<1x1xf32> to vector<1x128xf32>
    %32 = arith.mulf %31, %29 : vector<1x128xf32>
    %33 = arith.subf %30, %32 : vector<1x128xf32>
    %34 = vector.broadcast %29 : vector<1x128xf32> to vector<4x128xf32>
    %35 = arith.mulf %0, %34 : vector<4x128xf32>
    %36 = vector.broadcast %33 : vector<1x128xf32> to vector<4x128xf32>
    %37 = arith.addf %35, %36 : vector<4x128xf32>
    %c0_12 = arith.constant 0 : index
    %c0_13 = arith.constant 0 : index
    %38 = vector.load %arg3[%c0_12, %c0_13] : memref<4x128xf32, #tpu.memory_space<vmem>>, vector<4x128xf32>
    tpu.vector_store %arg3[%c0_12, %c0_13], %37 {strides = array<i32>} : memref<4x128xf32, #tpu.memory_space<vmem>>, vector<4x128xf32>,
    return
  }
}

</mosaic_0001>

<bundles_post_ra>
// kernel: tpu_custom_call.1
= control target key start
LH: loop header
LB: loop body
LE: loop exit
PB: predicated region body
PF: predicated region fallthrough
CT: control target
= control target key end

     0   :  { %8 = vsyncpa [#allocation3], 0  ;;  %s192_s0 = inlined_call_operand.hbm [shape: f32[4,128], index: 0, kind: input, shape index: {}]   ;;  %s193_s1 = inlined_call_operand.vmem [shape: f32[1,128], index: 1, kind: input, shape index: {}]   ;;  %s194_s2 = inlined_call_operand.vmem [shape: f32[1,128], index: 2, kind: input, shape index: {}]   ;;  %s195_s3 = inlined_call_operand.hbm [shape: f32[4,128], index: 3, kind: output, shape index: {}]  }
   0x1   :  { %9 = vsyncpa [#allocation4], 0  ;;  %s158_s12 = smov [#allocation2]  }
   0x2   :  { %s16_s13 = sshll.u32 %s158_s12, 4  ;;  %s17_s13 = int_to_ptr.vmem [resolvable:$true] %s16_s13 }
   0x3   :  { %s122_s14 = scalar_lea.vmem %s17_s13, 64  ;;  %p127_p1 = scmp.lt.s32.totalorder %s17_s13, %s17_s13 }
   0x4   :  { %p123_p0 = scmp.ne.s32.totalorder %s17_s13, %s122_s14  ;;  %p128_p2 = scmp.lt.s32.totalorder %s122_s14, %s122_s14 }
   0x6   :  { %p129_p3 = por %p128_p2, %p127_p1 }
   0x8   :  { %p130_p4 = pnand %p129_p3, %p123_p0 }
   0xa   :  { %133 = shalt.err (!%p130_p4)
}
   0xb   :  { %19 = dma.hbm_to_vmem [thread:$0]  %s192_s0, 64, %s17_s13, [#allocation3]  }
   0xc   :  { %154 = dma.done.wait [#allocation3], 64  }
   0xd   :  { %155 = vsyncadd [#allocation3], 4294967232  ;;  %vm28_vm0 = vcmask 1043456   ;;  %v27_v0 = vld [vmem:[#allocation2] sm:$0xf]  ;;  %v75_v32 = vlaneseq  ;;  %s159_s22 = smov [#allocation5]  }
   0xe   :  { %v29_v1 = vsel %vm28_vm0, %v27_v0, 0.0  ;;  %v40_v2 = vmul.f32 %v27_v0, %v27_v0  ;;  %v69_v34 = vld [vmem:[%s193_s1] sm:$0x1]  ;;  %s95_s23 = sshll.u32 %s159_s22, 4  ;;  %s96_s23 = int_to_ptr.vmem [resolvable:$true] %s95_s23 }
   0xf   :  { %30 = vadd.xlane.f32.xlu0 %v29_v1  ;;  %v76_v33 = vshrl.u32 %v75_v32, 7  ;;  %v71_v38 = vld [vmem:[%s194_s2] sm:$0x1]  ;;  %s134_s24 = scalar_lea.vmem %s96_s23, 64  ;;  %p139_p6 = scmp.lt.s32.totalorder %s96_s23, %s96_s23 }
  0x10   :  { %v41_v3 = vsel %vm28_vm0, %v40_v2, 0.0  ;;  %p135_p5 = scmp.ne.s32.totalorder %s96_s23, %s134_s24  ;;  %p140_p7 = scmp.lt.s32.totalorder %s134_s24, %s134_s24 }
  0x11   :  { %v77_v35 = vsub.s32 0, %v76_v33 }
  0x12   :  { %p141_p8 = por %p140_p7, %p139_p6 }
  0x13   :  { %42 = vadd.xlane.f32.xlu0 %v41_v3 }
  0x14   :  { %p142_p9 = pnand %p141_p8, %p135_p5 }
  0x98   :  { %v31_v4 = vpop.xlane.xlu0 %30 }
  0x99   :  { %v32_v5 = vrot.slane %v31_v4, 4 }
  0x9b   :  { %v33_v6 = vadd.f32 %v32_v5, %v31_v4 }
  0x9c   :  { %v43_v7 = vpop.xlane.xlu0 %42 }
  0x9d   :  { %v34_v8 = vrot.slane %v33_v6, 2  ;;  %v44_v9 = vrot.slane %v43_v7, 4 }
  0x9f   :  { %v45_v10 = vadd.f32 %v44_v9, %v43_v7  ;;  %v35_v11 = vadd.f32 %v34_v8, %v33_v6 }
  0xa1   :  { %v46_v12 = vrot.slane %v45_v10, 2  ;;  %v36_v13 = vrot.slane %v35_v11, 1 }
  0xa3   :  { %v47_v14 = vadd.f32 %v46_v12, %v45_v10  ;;  %v37_v15 = vadd.f32 %v36_v13, %v35_v11 }
  0xa5   :  { %104 = vpush %v37_v15  ;;  %v48_v16 = vrot.slane %v47_v14, 1 }
  0xa7   :  { %v49_v17 = vadd.f32 %v48_v16, %v47_v14 }
  0xa9   :  { %106 = vpush %v49_v17 }
  0xd6   :  { %s105_s0 = spop %104 }
  0xd7   :  { %v39_v18 = vstv %s105_s0 }
  0xd8   :  { %v53_v19 = vmul.f32 0.001953125, %v39_v18 }
  0xda   :  { %s107_s17 = spop %106  ;;  %v54_v20 = vmul.f32 512.0, %v53_v19 }
  0xdb   :  { %v51_v22 = vstv %s107_s17 }
  0xdc   :  { %v55_v21 = vmul.f32 %v54_v20, %v53_v19 }
  0xde   :  { %v56_v23 = vsub.f32 %v51_v22, %v55_v21 }
  0xe0   :  { %v57_v24 = vmul.f32 0.0019569471, %v56_v23 }
  0xe2   :  { %v58_v25 = vmax.f32 %v57_v24, 0.0 }
  0xe4   :  { %110 = vrsqrt.f32 %v58_v25  ;;  %vm61_vm1 = vcmp.eq.f32.partialorder %v58_v25, inf  ;;  %v64_v28 = vand.u32 2147483648, %v58_v25  ;;  %vm63_vm2 = vcmp.eq.f32.partialorder %v58_v25, 0.0 }
  0xf1   :  { %v111_v26 = vpop.eup %110 }
  0xf2   :  { %v60_v27 = vmul.f32 %v111_v26, %v58_v25 }
  0xf4   :  { %v62_v29 = vsel %vm61_vm1, %v58_v25, %v60_v27 }
  0xf5   :  { %v65_v30 = vsel %vm63_vm2, %v64_v28, %v62_v29 }
  0xf6   :  { %v66_v31 = vadd.f32 1e-06, %v65_v30 }
  0xf8   :  { %112 = vrcp.f32 %v66_v31 }
 0x105   :  { %v113_v36 = vpop.eup %112 }
 0x106   :  { %v70_v37 = vmul.f32 %v113_v36, %v69_v34 }
 0x108   :  { %v72_v39 = vmul.f32 %v70_v37, %v53_v19  ;;  %v78_v40 = vrot.slane %v70_v37, %v77_v35 }
 0x10a   :  { %v73_v41 = vsub.f32 %v71_v38, %v72_v39  ;;  %v80_v42 = vmul.f32 %v78_v40, %v27_v0 }
 0x10c   :  { %v85_v43 = vrot.slane %v73_v41, %v77_v35 }
 0x10e   :  { %v87_v44 = vadd.f32 %v85_v43, %v80_v42 }
 0x110   :  { %88 = vst [vmem:[#allocation5] sm:$0xf] %v87_v44 }
 0x111   :  { %145 = shalt.err (!%p142_p9)
}
 0x112   :  { %98 = dma.vmem_to_hbm [thread:$0]  %s96_s23, 64, %s195_s3, [#allocation4]  }
 0x113   :  { %156 = dma.done.wait [#allocation4], 64  }
 0x114   :  { %157 = vsyncadd [#allocation4], 4294967232 }
 0x115   :  { %102 = vsyncpa [#allocation3], 1 }
 0x116   :  { %103 = vsyncpa [#allocation4], 1 }

</bundles_post_ra>
